<compile_context>
chip_gen: v5e
topology: v5e:2x2
jax: 0.10.0
libtpu: 0.0.40
codegen_flags: <defaults>
</compile_context>

<pallas_src>
import jax
import jax.numpy as jnp
from jax.experimental import pallas as pl
from jax.experimental.pallas import tpu as pltpu

LANES = 128


def _cdiv(a, b):
    return (a + b - 1) // b


def _round_up(x, m):
    return _cdiv(x, m) * m


def _choose_row_block(rows, target_rows):
    """Per-step row block: multiple of 8 (sublane tile), big enough to amortize the
    per-step pipeline overhead, small enough for v7x VMEM, and yielding >=2 grid steps
    whenever there is enough work (v7x megacore split)."""
    target = max(8, (target_rows // 8) * 8)
    if rows <= 8:
        return rows
    if rows <= 2 * target:
        return min(_round_up(_cdiv(rows, 2), 8), rows)
    return target


def _mlp_kernel(params_ref, xr_ref, m_ref, o_ref):
    """params_ref: SMEM f32[2H+1] = [b1 (H), w2 (H), b2].
    xr_ref: VMEM f32[blk, 128*F]   -- 128 interleaved samples per row (natural x layout).
    m_ref:  VMEM f32[128*F, 128*H] -- de-interleave + fc1 folded: M[F*s+i, 128*j+s] = w1[i,j].
    o_ref:  VMEM f32[blk, 128]     -- sigmoid output; sample s of row r lands at lane s."""
    H = m_ref.shape[-1] // LANES

    # fc1 (+ batch de-interleave) as one MXU matmul with f32 accumulation.
    # y[:, 128*j + s] = pre-bias hidden unit j of local sample s -- already lane-dense.
    y = jnp.dot(xr_ref[...], m_ref[...], preferred_element_type=jnp.float32)

    # ReLU + fc2 on the VPU.  Slices are 128-lane-group aligned (free vreg views);
    # weights / biases come from SMEM scalars, so no broadcasts inside the loop.
    z = None
    for j in range(H):
        hj = jnp.maximum(y[:, j * LANES:(j + 1) * LANES] + params_ref[j], 0.0)  # + b1[j], ReLU
        term = params_ref[H + j] * hj                                           # * w2[j]
        z = term if z is None else z + term
    z = z + params_ref[2 * H]                                                   # + b2

    # sigmoid(z) = 0.5 * (1 + tanh(z / 2)): a single EUP op, no approx-reciprocal error.
    o_ref[...] = (0.5 * (1.0 + jnp.tanh(0.5 * z))).astype(o_ref.dtype)


def net_forward(x, w1, b1, w2, b2, *, block_rows=2048):
    """x: (B, F) f32. w1: (F, 3), b1: (1, 3), w2: (3, 1), b2: (1, 1). Returns (B, 1)."""
    B, F = x.shape
    H = w1.shape[1]
    assert w2.shape == (H, 1) and b1.reshape(-1).shape[0] == H

    # This lane-packed formulation targets tiny feature counts (the module spec is F == 3;
    # M grows as 128*F).  For wide inputs a plain (blk, F) @ (F, H) MXU matmul is the
    # right formulation instead.
    # TODO(synk): add a standard tiled-MXU path for large n_features (F >= ~32).
    assert F <= 16, "lane-packed path is only intended for tiny n_features"

    x = x.astype(jnp.float32)

    # ---- input plumbing: zero wrapper-side data movement for 128-aligned B ----
    B128 = _round_up(B, LANES)
    if B128 != B:
        # Only materializes a copy when B is not a multiple of 128 (e.g. the tiny demo).
        x = jnp.pad(x, ((0, B128 - B), (0, 0)))
    rows = B128 // LANES
    xr = x.reshape(rows, LANES * F)          # free row-major reinterpretation
    if rows < 8:
        # Keep the MXU tile sublane-aligned for tiny batches (<= 10 KiB pad).
        xr = jnp.pad(xr, ((0, 8 - rows), (0, 0)))
        rows = 8

    blk = _choose_row_block(rows, block_rows)
    grid = (_cdiv(rows, blk),)

    # De-interleave + fc1 folded into one lane-permutation weight matrix:
    #   M[F*s + i, 128*j + s] = w1[i, j]      (s = local sample lane, i = feature, j = hidden)
    s = jnp.arange(LANES)
    M = jnp.zeros((LANES * F, LANES * H), jnp.float32)
    for i in range(F):
        for j in range(H):
            M = M.at[F * s + i, LANES * j + s].set(w1[i, j])

    # Small scalars for fc2 / biases, packed into one SMEM vector: [b1 (H), w2 (H), b2].
    params = jnp.concatenate(
        [b1.reshape(-1), w2.reshape(-1), b2.reshape(-1)]
    ).astype(jnp.float32)

    out = pl.pallas_call(
        _mlp_kernel,
        out_shape=jax.ShapeDtypeStruct((rows, LANES), jnp.float32),
        grid=grid,
        in_specs=[
            pl.BlockSpec(memory_space=pltpu.SMEM),                    # packed scalar params
            pl.BlockSpec((blk, LANES * F), lambda r: (r, 0)),          # x, natural layout
            pl.BlockSpec((LANES * F, LANES * H), lambda r: (0, 0)),    # folded fc1 matrix
        ],
        out_specs=pl.BlockSpec((blk, LANES), lambda r: (r, 0)),        # lane-dense output
        compiler_params=pltpu.CompilerParams(
            dimension_semantics=("parallel",),        # megacore split on v7x; no-op v5e/v6e
            vmem_limit_bytes=40 * 1024 * 1024,        # headroom under v7x's 64 MiB physical
        ),
        cost_estimate=pl.CostEstimate(
            flops=int(2 * rows * (LANES * F) * (LANES * H) + 8 * rows * LANES * H),
            transcendentals=int(rows * LANES),
            bytes_accessed=int(4 * (rows * LANES * (F + 1) + (LANES * F) * (LANES * H))),
        ),
    )(params, xr, M)

    # Contiguous slice + reshape (free) -- no trailing transpose.
    return out.reshape(-1)[:B].reshape(B, 1)


def init_params(key, n_features):
    """Deterministic init mimicking nn.Linear shapes (weights stored transposed)."""
    k1, k2, k3, k4 = jax.random.split(key, 4)
    lim1 = 1.0 / jnp.sqrt(n_features)
    lim2 = 1.0 / jnp.sqrt(3.0)
    w1 = jax.random.uniform(k1, (n_features, 3), jnp.float32, -lim1, lim1)
    b1 = jax.random.uniform(k2, (1, 3), jnp.float32, -lim1, lim1)
    w2 = jax.random.uniform(k3, (3, 1), jnp.float32, -lim2, lim2)
    b2 = jax.random.uniform(k4, (1, 1), jnp.float32, -lim2, lim2)
    return w1, b1, w2, b2


if __name__ == "__main__":
    key = jax.random.PRNGKey(0)
    k_x, k_p = jax.random.split(key)

    n_features = 3   # "3 input nodes" per the module docstring
    batch = 8

    x = jax.random.normal(k_x, (batch, n_features), jnp.float32)
    w1, b1, w2, b2 = init_params(k_p, n_features)

    out = jax.block_until_ready(net_forward(x, w1, b1, w2, b2))

    # Reference in plain JAX, forced to accurate matmul precision so the comparison
    # only reflects the kernel's own error.
    with jax.default_matmul_precision("highest"):
        ref = jax.nn.sigmoid(jnp.maximum(x @ w1 + b1, 0.0) @ w2 + b2)

    assert out.shape == (batch, 1)
    # Tolerance covers the worst case if the compiler lowers the f32 fc1 matmul through a
    # reduced-precision MXU pass; typical error is ~1e-6 with the exact f32 path.
    assert jnp.allclose(out, ref, atol=2e-3, rtol=2e-3), float(jnp.max(jnp.abs(out - ref)))

    print("KERNEL_OK")
</pallas_src>

<mosaic_0001>
module attributes {stable_mosaic.version = 11 : i64} {
  func.func @_mlp_kernel(%arg0: i32, %arg1: memref<7xf32, #tpu.memory_space<smem>>, %arg2: memref<8x384xf32, #tpu.memory_space<vmem>>, %arg3: memref<384x384xf32, #tpu.memory_space<vmem>>, %arg4: memref<8x128xf32, #tpu.memory_space<vmem>>) attributes {dimension_semantics = [#tpu.dimension_semantics<parallel>], iteration_bounds = array<i64: 1>, scalar_prefetch = 0 : i64, scratch_operands = 0 : i64, tpu.core_type = #tpu.core_type<tc>, window_params = [{transform_indices = @transform_0, window_bounds = array<i64: 7>}, {transform_indices = @transform_1, window_bounds = array<i64: 8, 384>}, {pipeline_mode = #tpu.pipeline_mode<synchronous>, transform_indices = @transform_2, window_bounds = array<i64: 384, 384>}, {transform_indices = @transform_3, window_bounds = array<i64: 8, 128>}]} {
    %c0 = arith.constant 0 : index
    %c0_0 = arith.constant 0 : index
    %0 = vector.load %arg2[%c0, %c0_0] : memref<8x384xf32, #tpu.memory_space<vmem>>, vector<8x384xf32>
    %c0_1 = arith.constant 0 : index
    %c0_2 = arith.constant 0 : index
    %1 = vector.load %arg3[%c0_1, %c0_2] : memref<384x384xf32, #tpu.memory_space<vmem>>, vector<384x384xf32>
    %cst = arith.constant dense<0.000000e+00> : vector<8x384xf32>
    %2 = tpu.matmul %0, %1, %cst {dimension_numbers = #tpu.dot_dimension_numbers<[1], [0], [0], [1], [0, 0, 1, 1], [], []>} : vector<8x384xf32>, vector<384x384xf32>, vector<8x384xf32> -> vector<8x384xf32>
    %3 = vector.extract_strided_slice %2 {offsets = [0, 0], sizes = [8, 128], strides = [1, 1]} : vector<8x384xf32> to vector<8x128xf32>
    %c0_3 = arith.constant 0 : index
    %4 = memref.load %arg1[%c0_3] : memref<7xf32, #tpu.memory_space<smem>>
    %5 = vector.broadcast %4 : f32 to vector<8x128xf32>
    %6 = arith.addf %3, %5 : vector<8x128xf32>
    %cst_4 = arith.constant 0.000000e+00 : f32
    %7 = vector.broadcast %cst_4 : f32 to vector<8x128xf32>
    %8 = arith.maximumf %6, %7 : vector<8x128xf32>
    %c3 = arith.constant 3 : index
    %9 = memref.load %arg1[%c3] : memref<7xf32, #tpu.memory_space<smem>>
    %10 = vector.broadcast %9 : f32 to vector<8x128xf32>
    %11 = arith.mulf %10, %8 : vector<8x128xf32>
    %12 = vector.extract_strided_slice %2 {offsets = [0, 128], sizes = [8, 128], strides = [1, 1]} : vector<8x384xf32> to vector<8x128xf32>
    %c1 = arith.constant 1 : index
    %13 = memref.load %arg1[%c1] : memref<7xf32, #tpu.memory_space<smem>>
    %14 = vector.broadcast %13 : f32 to vector<8x128xf32>
    %15 = arith.addf %12, %14 : vector<8x128xf32>
    %cst_5 = arith.constant 0.000000e+00 : f32
    %16 = vector.broadcast %cst_5 : f32 to vector<8x128xf32>
    %17 = arith.maximumf %15, %16 : vector<8x128xf32>
    %c4 = arith.constant 4 : index
    %18 = memref.load %arg1[%c4] : memref<7xf32, #tpu.memory_space<smem>>
    %19 = vector.broadcast %18 : f32 to vector<8x128xf32>
    %20 = arith.mulf %19, %17 : vector<8x128xf32>
    %21 = arith.addf %11, %20 : vector<8x128xf32>
    %22 = vector.extract_strided_slice %2 {offsets = [0, 256], sizes = [8, 128], strides = [1, 1]} : vector<8x384xf32> to vector<8x128xf32>
    %c2 = arith.constant 2 : index
    %23 = memref.load %arg1[%c2] : memref<7xf32, #tpu.memory_space<smem>>
    %24 = vector.broadcast %23 : f32 to vector<8x128xf32>
    %25 = arith.addf %22, %24 : vector<8x128xf32>
    %cst_6 = arith.constant 0.000000e+00 : f32
    %26 = vector.broadcast %cst_6 : f32 to vector<8x128xf32>
    %27 = arith.maximumf %25, %26 : vector<8x128xf32>
    %c5 = arith.constant 5 : index
    %28 = memref.load %arg1[%c5] : memref<7xf32, #tpu.memory_space<smem>>
    %29 = vector.broadcast %28 : f32 to vector<8x128xf32>
    %30 = arith.mulf %29, %27 : vector<8x128xf32>
    %31 = arith.addf %21, %30 : vector<8x128xf32>
    %c6 = arith.constant 6 : index
    %32 = memref.load %arg1[%c6] : memref<7xf32, #tpu.memory_space<smem>>
    %33 = vector.broadcast %32 : f32 to vector<8x128xf32>
    %34 = arith.addf %31, %33 : vector<8x128xf32>
    %cst_7 = arith.constant 5.000000e-01 : f32
    %35 = vector.broadcast %cst_7 : f32 to vector<8x128xf32>
    %36 = arith.mulf %35, %34 : vector<8x128xf32>
    %37 = math.tanh %36 : vector<8x128xf32>
    %cst_8 = arith.constant 1.000000e+00 : f32
    %38 = vector.broadcast %cst_8 : f32 to vector<8x128xf32>
    %39 = arith.addf %38, %37 : vector<8x128xf32>
    %cst_9 = arith.constant 5.000000e-01 : f32
    %40 = vector.broadcast %cst_9 : f32 to vector<8x128xf32>
    %41 = arith.mulf %40, %39 : vector<8x128xf32>
    %c0_10 = arith.constant 0 : index
    %c0_11 = arith.constant 0 : index
    %42 = vector.load %arg4[%c0_10, %c0_11] : memref<8x128xf32, #tpu.memory_space<vmem>>, vector<8x128xf32>
    tpu.vector_store %arg4[%c0_10, %c0_11], %41 {strides = array<i32>} : memref<8x128xf32, #tpu.memory_space<vmem>>, vector<8x128xf32>,
    return
  }
  func.func @transform_0(%arg0: i32) -> i32 {
    %c0_i32 = arith.constant 0 : i32
    %c0_i32_0 = arith.constant 0 : i32
    return %c0_i32 : i32
  }
  func.func @transform_1(%arg0: i32) -> (i32, i32) {
    %c0_i32 = arith.constant 0 : i32
    %c0_i32_0 = arith.constant 0 : i32
    return %arg0, %c0_i32 : i32, i32
  }
  func.func @transform_2(%arg0: i32) -> (i32, i32) {
    %c0_i32 = arith.constant 0 : i32
    %c0_i32_0 = arith.constant 0 : i32
    %c0_i32_1 = arith.constant 0 : i32
    return %c0_i32, %c0_i32_0 : i32, i32
  }
  func.func @transform_3(%arg0: i32) -> (i32, i32) {
    %c0_i32 = arith.constant 0 : i32
    %c0_i32_0 = arith.constant 0 : i32
    return %arg0, %c0_i32 : i32, i32
  }
}

</mosaic_0001>

<bundles_post_ra>
// kernel: tpu_custom_call.1
= control target key start
LH: loop header
LB: loop body
LE: loop exit
PB: predicated region body
PF: predicated region fallthrough
CT: control target
= control target key end

     0   :  { %8 = vsyncpa [#allocation5], 0  ;;  %s594_s0 = inlined_call_operand.hbm [shape: f32[7], index: 0, kind: input, shape index: {}]   ;;  %s595_s1 = inlined_call_operand.hbm [shape: f32[8,384], index: 1, kind: input, shape index: {}]   ;;  %s596_s2 = inlined_call_operand.hbm [shape: f32[384,384], index: 2, kind: input, shape index: {}]   ;;  %s597_s3 = inlined_call_operand.hbm [shape: f32[8,128], index: 3, kind: output, shape index: {}]  }
   0x1   :  { %9 = vsyncpa [#allocation3], 0 }
   0x2   :  { %10 = vsyncpa [#allocation8], 0 }
   0x3   :  { %11 = vsyncpa [#allocation4], 0  ;;  %s17_s14 = sshll.u32 %s594_s0, 4  ;;  %s26_s17 = sshll.u32 %s595_s1, 4  ;;  %s18_s14 = int_to_ptr.hbm [resolvable:$true] %s17_s14  ;;  %s27_s17 = int_to_ptr.hbm [resolvable:$true] %s26_s17 }
   0x4   :  { %s541_s18 = smov [#allocation2]   ;;  %s542_s19 = smov [#allocation6]  }
   0x5   :  { %20 = dma.hbm_to_smem %s18_s14, 16, %s541_s18, [#allocation5]  }
   0x6   :  { %s28_s20 = sshll.u32 %s542_s19, 4  ;;  %s36_s23 = sshll.u32 %s596_s2, 4  ;;  %s29_s20 = int_to_ptr.vmem [resolvable:$true] %s28_s20  ;;  %s37_s23 = int_to_ptr.hbm [resolvable:$true] %s36_s23 }
   0x7   :  { %31 = dma.hbm_to_vmem [thread:$0]  %s27_s17, 384, %s29_s20, [#allocation3]  }
   0x8   :  { %s543_s24 = smov [#allocation7]   ;;  %s544_s0 = smov 384  }
   0x9   :  { %s38_s25 = sshll.u32 %s543_s24, 4  ;;  %s545_s26 = smov 24   ;;  %s39_s25 = int_to_ptr.vmem [resolvable:$true] %s38_s25 }
   0xa   :  { %44 = dma.hbm_to_vmem [thread:$0]  %s37_s23, 18432, %s39_s25, [#allocation8], %s544_s0, %s544_s0, %s545_s26  }
   0xb   :  { %533 = dma.done.wait [#allocation5], 16  }
   0xc   :  { %534 = vsyncadd [#allocation5], 4294967280 }
   0xd   :  { %535 = dma.done.wait [#allocation3], 384  }
   0xe   :  { %536 = vsyncadd [#allocation3], 4294966912 }
   0xf   :  { %537 = dma.done.wait [#allocation8], 18432  }
  0x10   :  { %538 = vsyncadd [#allocation8], 4294948864 }
  0x11   :  { %57 = sfence }
  0x12   :  { %v106_v0 = vld [vmem:[#allocation7 + $0x168] sm:$0xff]  ;;  %v103_v1 = vld [vmem:[#allocation7 + $0x150] sm:$0xff]  ;;  %v100_v4 = vld [vmem:[#allocation7 + $0x138] sm:$0xff]  ;;  %s385_s1 = sld [smem:[#allocation2]]  ;;  %s546_s5 = smov [#allocation9]  }
  0x13   :  { %v154_v2 = vld [vmem:[#allocation7 + $0x2e8] sm:$0xff]  ;;  %205 = vmatpush.msra.mxu0 %v106_v0  ;;  %v151_v3 = vld [vmem:[#allocation7 + $0x2d0] sm:$0xff]  ;;  %v148_v5 = vld [vmem:[#allocation7 + $0x2b8] sm:$0xff]  ;;  %s436_s2 = sld [smem:[#allocation2 + $0x1]]  ;;  %s421_s6 = sshll.u32 %s546_s5, 4  ;;  %s422_s6 = int_to_ptr.vmem [resolvable:$true] %s421_s6 }
  0x14   :  { %225 = vmatpush.msra.mxu1 %v154_v2  ;;  %v97_v6 = vld [vmem:[#allocation7 + $0x120] sm:$0xff]  ;;  %v94_v8 = vld [vmem:[#allocation7 + $0x108] sm:$0xff]  ;;  %v91_v11 = vld [vmem:[#allocation7 + $0xf0] sm:$0xff]  ;;  %s435_s27 = sld [smem:[#allocation2 + $0x3]]  ;;  %s423_s9 = sshll.u32 %s597_s3, 4  ;;  %s424_s9 = int_to_ptr.hbm [resolvable:$true] %s423_s9 }
  0x15   :  { %206 = vmatpush.msra.mxu0 %v103_v1  ;;  %v145_v7 = vld [vmem:[#allocation7 + $0x2a0] sm:$0xff]  ;;  %v142_v9 = vld [vmem:[#allocation7 + $0x288] sm:$0xff]  ;;  %v139_v12 = vld [vmem:[#allocation7 + $0x270] sm:$0xff]  ;;  %s437_s28 = sld [smem:[#allocation2 + $0x4]] }
  0x16   :  { %226 = vmatpush.msra.mxu1 %v151_v3  ;;  %v202_v10 = vld [vmem:[#allocation7 + $0x468] sm:$0xff]  ;;  %v107_v13 = vld [vmem:[#allocation7 + $0x170] sm:$0xff]  ;;  %v104_v15 = vld [vmem:[#allocation7 + $0x158] sm:$0xff]  ;;  %s438_s29 = sld [smem:[#allocation2 + $0x2]] }
  0x17   :  { %207 = vmatpush.msra.mxu0 %v100_v4  ;;  %245 = vmatpush.msra.mxu2 %v202_v10  ;;  %v199_v14 = vld [vmem:[#allocation7 + $0x450] sm:$0xff]  ;;  %v88_v16 = vld [vmem:[#allocation7 + $0xd8] sm:$0xff]  ;;  %v101_v19 = vld [vmem:[#allocation7 + $0x140] sm:$0xff]  ;;  %s439_s30 = sld [smem:[#allocation2 + $0x5]] }
  0x18   :  { %227 = vmatpush.msra.mxu1 %v148_v5  ;;  %v136_v17 = vld [vmem:[#allocation7 + $0x258] sm:$0xff]  ;;  %265 = vmatpush.msra.mxu3 %v107_v13  ;;  %v193_v20 = vld [vmem:[#allocation7 + $0x420] sm:$0xff]  ;;  %v98_v23 = vld [vmem:[#allocation7 + $0x128] sm:$0xff]  ;;  %s440_s4 = sld [smem:[#allocation2 + $0x6]] }
  0x19   :  { %208 = vmatpush.msra.mxu0 %v97_v6  ;;  %246 = vmatpush.msra.mxu2 %v199_v14  ;;  %v196_v18 = vld [vmem:[#allocation7 + $0x438] sm:$0xff]  ;;  %v85_v21 = vld [vmem:[#allocation7 + $0xc0] sm:$0xff]  ;;  %v190_v24 = vld [vmem:[#allocation7 + $0x408] sm:$0xff] }
  0x1a   :  { %228 = vmatpush.msra.mxu1 %v145_v7  ;;  %v133_v22 = vld [vmem:[#allocation7 + $0x240] sm:$0xff]  ;;  %266 = vmatpush.msra.mxu3 %v104_v15  ;;  %v82_v25 = vld [vmem:[#allocation7 + $0xa8] sm:$0xff]  ;;  %v95_v27 = vld [vmem:[#allocation7 + $0x110] sm:$0xff] }
  0x1b   :  { %209 = vmatpush.msra.mxu0 %v94_v8  ;;  %247 = vmatpush.msra.mxu2 %v196_v18  ;;  %v130_v26 = vld [vmem:[#allocation7 + $0x228] sm:$0xff]  ;;  %v187_v28 = vld [vmem:[#allocation7 + $0x3f0] sm:$0xff]  ;;  %v92_v31 = vld [vmem:[#allocation7 + $0xf8] sm:$0xff] }
  0x1c   :  { %229 = vmatpush.msra.mxu1 %v142_v9  ;;  %267 = vmatpush.msra.mxu3 %v101_v19  ;;  %v79_v29 = vld [vmem:[#allocation7 + $0x90] sm:$0xff]  ;;  %v184_v32 = vld [vmem:[#allocation7 + $0x3d8] sm:$0xff]  ;;  %v89_v35 = vld [vmem:[#allocation7 + $0xe0] sm:$0xff] }
  0x1d   :  { %210 = vmatpush.msra.mxu0 %v91_v11  ;;  %248 = vmatpush.msra.mxu2 %v193_v20  ;;  %v127_v30 = vld [vmem:[#allocation7 + $0x210] sm:$0xff]  ;;  %v76_v33 = vld [vmem:[#allocation7 + $0x78] sm:$0xff]  ;;  %v181_v36 = vld [vmem:[#allocation7 + $0x3c0] sm:$0xff] }
  0x1e   :  { %230 = vmatpush.msra.mxu1 %v139_v12  ;;  %268 = vmatpush.msra.mxu3 %v98_v23  ;;  %v124_v34 = vld [vmem:[#allocation7 + $0x1f8] sm:$0xff]  ;;  %v73_v37 = vld [vmem:[#allocation7 + $0x60] sm:$0xff]  ;;  %v86_v39 = vld [vmem:[#allocation7 + $0xc8] sm:$0xff] }
  0x1f   :  { %211 = vmatpush.msra.mxu0 %v88_v16  ;;  %249 = vmatpush.msra.mxu2 %v190_v24  ;;  %v121_v38 = vld [vmem:[#allocation7 + $0x1e0] sm:$0xff]  ;;  %v178_v40 = vld [vmem:[#allocation7 + $0x3a8] sm:$0xff]  ;;  %v83_v43 = vld [vmem:[#allocation7 + $0xb0] sm:$0xff] }
  0x20   :  { %231 = vmatpush.msra.mxu1 %v136_v17  ;;  %269 = vmatpush.msra.mxu3 %v95_v27  ;;  %v70_v41 = vld [vmem:[#allocation7 + $0x48] sm:$0xff]  ;;  %v175_v44 = vld [vmem:[#allocation7 + $0x390] sm:$0xff]  ;;  %v80_v47 = vld [vmem:[#allocation7 + $0x98] sm:$0xff] }
  0x21   :  { %212 = vmatpush.msra.mxu0 %v85_v21  ;;  %250 = vmatpush.msra.mxu2 %v187_v28  ;;  %v118_v42 = vld [vmem:[#allocation7 + $0x1c8] sm:$0xff]  ;;  %v67_v45 = vld [vmem:[#allocation7 + $0x30] sm:$0xff]  ;;  %v172_v48 = vld [vmem:[#allocation7 + $0x378] sm:$0xff] }
  0x22   :  { %232 = vmatpush.msra.mxu1 %v133_v22  ;;  %270 = vmatpush.msra.mxu3 %v92_v31  ;;  %v115_v46 = vld [vmem:[#allocation7 + $0x1b0] sm:$0xff]  ;;  %v64_v49 = vld [vmem:[#allocation7 + $0x18] sm:$0xff]  ;;  %v77_v51 = vld [vmem:[#allocation7 + $0x80] sm:$0xff] }
  0x23   :  { %213 = vmatpush.msra.mxu0 %v82_v25  ;;  %251 = vmatpush.msra.mxu2 %v184_v32  ;;  %v112_v50 = vld [vmem:[#allocation7 + $0x198] sm:$0xff]  ;;  %v169_v52 = vld [vmem:[#allocation7 + $0x360] sm:$0xff]  ;;  %v155_v55 = vld [vmem:[#allocation7 + $0x2f0] sm:$0xff] }
  0x24   :  { %233 = vmatpush.msra.mxu1 %v130_v26  ;;  %271 = vmatpush.msra.mxu3 %v89_v35  ;;  %v61_v53 = vld [vmem:[#allocation7] sm:$0xff]  ;;  %v203_v56 = vld [vmem:[#allocation7 + $0x470] sm:$0xff]  ;;  %v74_v57 = vld [vmem:[#allocation7 + $0x68] sm:$0xff] }
  0x25   :  { %214 = vmatpush.msra.mxu0 %v79_v29  ;;  %252 = vmatpush.msra.mxu2 %v181_v36  ;;  %v109_v54 = vld [vmem:[#allocation7 + $0x180] sm:$0xff]  ;;  %v166_v58 = vld [vmem:[#allocation7 + $0x348] sm:$0xff]  ;;  %v152_v59 = vld [vmem:[#allocation7 + $0x2d8] sm:$0xff] }
  0x26   :  { %234 = vmatpush.msra.mxu1 %v127_v30  ;;  %272 = vmatpush.msra.mxu3 %v86_v39  ;;  %v200_v60 = vld [vmem:[#allocation7 + $0x458] sm:$0xff]  ;;  %v71_v61 = vld [vmem:[#allocation7 + $0x50] sm:$0xff]  ;;  %v149_v63 = vld [vmem:[#allocation7 + $0x2c0] sm:$0xff] }
  0x27   :  { %215 = vmatpush.msra.mxu0 %v76_v33  ;;  %253 = vmatpush.msra.mxu2 %v178_v40  ;;  %v163_v62 = vld [vmem:[#allocation7 + $0x330] sm:$0xff]  ;;  %v197_v0 = vld [vmem:[#allocation7 + $0x440] sm:$0xff]  ;;  %v68_v1 = vld [vmem:[#allocation7 + $0x38] sm:$0xff] }
  0x28   :  { %235 = vmatpush.msra.mxu1 %v124_v34  ;;  %273 = vmatpush.msra.mxu3 %v83_v43  ;;  %v160_v2 = vld [vmem:[#allocation7 + $0x318] sm:$0xff]  ;;  %v146_v3 = vld [vmem:[#allocation7 + $0x2a8] sm:$0xff]  ;;  %v65_v5 = vld [vmem:[#allocation7 + $0x20] sm:$0xff] }
  0x29   :  { %216 = vmatpush.msra.mxu0 %v73_v37  ;;  %254 = vmatpush.msra.mxu2 %v175_v44  ;;  %v194_v4 = vld [vmem:[#allocation7 + $0x428] sm:$0xff]  ;;  %v157_v6 = vld [vmem:[#allocation7 + $0x300] sm:$0xff]  ;;  %v143_v7 = vld [vmem:[#allocation7 + $0x290] sm:$0xff] }
  0x2a   :  { %236 = vmatpush.msra.mxu1 %v121_v38  ;;  %274 = vmatpush.msra.mxu3 %v80_v47  ;;  %v191_v8 = vld [vmem:[#allocation7 + $0x410] sm:$0xff]  ;;  %v62_v9 = vld [vmem:[#allocation7 + $0x8] sm:$0xff]  ;;  %v140_v11 = vld [vmem:[#allocation7 + $0x278] sm:$0xff] }
  0x2b   :  { %217 = vmatpush.msra.mxu0 %v70_v41  ;;  %255 = vmatpush.msra.mxu2 %v172_v48  ;;  %v576_v10 = vld [vmem:[#allocation6] sm:$0xff]  ;;  %v188_v12 = vld [vmem:[#allocation7 + $0x3f8] sm:$0xff]  ;;  %v137_v15 = vld [vmem:[#allocation7 + $0x260] sm:$0xff] }
  0x2c   :  { %237 = vmatpush.msra.mxu1 %v118_v42  ;;  %275 = vmatpush.msra.mxu3 %v77_v51  ;;  %v108_v13 = vld [vmem:[#allocation7 + $0x178] sm:$0xff]  ;;  %v185_v16 = vld [vmem:[#allocation7 + $0x3e0] sm:$0xff]  ;;  %v579_v17 = vld [vmem:[#allocation6 + $0x8] sm:$0xff] }
  0x2d   :  { %218 = vmatpush.msra.mxu0 %v67_v45  ;;  %256 = vmatpush.msra.mxu2 %v169_v52  ;;  %v156_v14 = vld [vmem:[#allocation7 + $0x2f8] sm:$0xff]  ;;  %v134_v18 = vld [vmem:[#allocation7 + $0x248] sm:$0xff]  ;;  %v105_v20 = vld [vmem:[#allocation7 + $0x160] sm:$0xff] }
  0x2e   :  { %238 = vmatpush.msra.mxu1 %v115_v46  ;;  %276 = vmatpush.msra.mxu3 %v74_v57  ;;  %v182_v19 = vld [vmem:[#allocation7 + $0x3c8] sm:$0xff]  ;;  %v153_v21 = vld [vmem:[#allocation7 + $0x2e0] sm:$0xff]  ;;  %v131_v22 = vld [vmem:[#allocation7 + $0x230] sm:$0xff] }
  0x2f   :  { %219 = vmatpush.msra.mxu0 %v64_v49  ;;  %257 = vmatpush.msra.mxu2 %v166_v58  ;;  %v179_v23 = vld [vmem:[#allocation7 + $0x3b0] sm:$0xff]  ;;  %v583_v24 = vld [vmem:[#allocation6 + $0x10] sm:$0xff]  ;;  %v150_v25 = vld [vmem:[#allocation7 + $0x2c8] sm:$0xff] }
  0x30   :  { %239 = vmatpush.msra.mxu1 %v112_v50  ;;  %277 = vmatpush.msra.mxu3 %v71_v61  ;;  %v128_v26 = vld [vmem:[#allocation7 + $0x218] sm:$0xff]  ;;  %v102_v28 = vld [vmem:[#allocation7 + $0x148] sm:$0xff]  ;;  %v147_v29 = vld [vmem:[#allocation7 + $0x2b0] sm:$0xff] }
  0x31   :  { %220 = vmatpush.msra.mxu0 %v61_v53  ;;  %258 = vmatpush.msra.mxu2 %v163_v62  ;;  %v176_v27 = vld [vmem:[#allocation7 + $0x398] sm:$0xff]  ;;  %v125_v30 = vld [vmem:[#allocation7 + $0x200] sm:$0xff]  ;;  %v99_v32 = vld [vmem:[#allocation7 + $0x130] sm:$0xff] }
  0x32   :  { %240 = vmatpush.msra.mxu1 %v109_v54  ;;  %278 = vmatpush.msra.mxu3 %v68_v1  ;;  %v173_v31 = vld [vmem:[#allocation7 + $0x380] sm:$0xff]  ;;  %v144_v33 = vld [vmem:[#allocation7 + $0x298] sm:$0xff]  ;;  %v122_v34 = vld [vmem:[#allocation7 + $0x1e8] sm:$0xff] }
  0x33   :  { %285 = vmatpush.msrb.mxu0 %v155_v55  ;;  %259 = vmatpush.msra.mxu2 %v160_v2  ;;  %v170_v35 = vld [vmem:[#allocation7 + $0x368] sm:$0xff]  ;;  %v96_v36 = vld [vmem:[#allocation7 + $0x118] sm:$0xff]  ;;  %v141_v37 = vld [vmem:[#allocation7 + $0x280] sm:$0xff] }
  0x34   :  { %305 = vmatpush.msrb.mxu1 %v203_v56  ;;  %279 = vmatpush.msra.mxu3 %v65_v5  ;;  %v119_v38 = vld [vmem:[#allocation7 + $0x1d0] sm:$0xff]  ;;  %v93_v40 = vld [vmem:[#allocation7 + $0x100] sm:$0xff]  ;;  %v138_v41 = vld [vmem:[#allocation7 + $0x268] sm:$0xff] }
  0x35   :  { %286 = vmatpush.msrb.mxu0 %v152_v59  ;;  %260 = vmatpush.msra.mxu2 %v157_v6  ;;  %v167_v39 = vld [vmem:[#allocation7 + $0x350] sm:$0xff]  ;;  %v116_v42 = vld [vmem:[#allocation7 + $0x1b8] sm:$0xff]  ;;  %v90_v44 = vld [vmem:[#allocation7 + $0xe8] sm:$0xff] }
  0x36   :  { %306 = vmatpush.msrb.mxu1 %v200_v60  ;;  %280 = vmatpush.msra.mxu3 %v62_v9  ;;  %v164_v43 = vld [vmem:[#allocation7 + $0x338] sm:$0xff]  ;;  %v135_v45 = vld [vmem:[#allocation7 + $0x250] sm:$0xff]  ;;  %v113_v46 = vld [vmem:[#allocation7 + $0x1a0] sm:$0xff] }
  0x37   :  { %287 = vmatpush.msrb.mxu0 %v149_v63  ;;  %325 = vmatpush.msrb.mxu2 %v108_v13  ;;  %v161_v47 = vld [vmem:[#allocation7 + $0x320] sm:$0xff]  ;;  %v87_v48 = vld [vmem:[#allocation7 + $0xd0] sm:$0xff]  ;;  %v132_v49 = vld [vmem:[#allocation7 + $0x238] sm:$0xff] }
  0x38   :  { %307 = vmatpush.msrb.mxu1 %v197_v0  ;;  %221 = vmatmul.f32.vlgmr.msra.gmra.mxu0 %v576_v10  ;;  %v110_v50 = vld [vmem:[#allocation7 + $0x188] sm:$0xff]  ;;  %v204_v52 = vld [vmem:[#allocation7 + $0x478] sm:$0xff]  ;;  %v129_v54 = vld [vmem:[#allocation7 + $0x220] sm:$0xff] }
  0x39   :  { %288 = vmatpush.msrb.mxu0 %v146_v3  ;;  %345 = vmatpush.msrb.mxu3 %v156_v14  ;;  %v158_v51 = vld [vmem:[#allocation7 + $0x308] sm:$0xff]  ;;  %v84_v53 = vld [vmem:[#allocation7 + $0xb8] sm:$0xff]  ;;  %v201_v55 = vld [vmem:[#allocation7 + $0x460] sm:$0xff] }
  0x3a   :  { %308 = vmatpush.msrb.mxu1 %v194_v4  ;;  %281 = vmatmul.f32.vlgmr.msra.gmra.mxu3 %v576_v10  ;;  %v81_v56 = vld [vmem:[#allocation7 + $0xa0] sm:$0xff]  ;;  %v126_v57 = vld [vmem:[#allocation7 + $0x208] sm:$0xff]  ;;  %v123_v60 = vld [vmem:[#allocation7 + $0x1f0] sm:$0xff] }
  0x3b   :  { %289 = vmatpush.msrb.mxu0 %v143_v7  ;;  %241 = vmatmul.f32.vlgmr.msra.gmra.mxu1 %v579_v17  ;;  %v198_v58 = vld [vmem:[#allocation7 + $0x448] sm:$0xff]  ;;  %v195_v61 = vld [vmem:[#allocation7 + $0x430] sm:$0xff]  ;;  %v120_v63 = vld [vmem:[#allocation7 + $0x1d8] sm:$0xff] }
  0x3c   :  { %309 = vmatpush.msrb.mxu1 %v191_v8  ;;  %326 = vmatpush.msrb.mxu2 %v105_v20  ;;  %v78_v59 = vld [vmem:[#allocation7 + $0x88] sm:$0xff]  ;;  %v75_v62 = vld [vmem:[#allocation7 + $0x70] sm:$0xff]  ;;  %v192_v0 = vld [vmem:[#allocation7 + $0x418] sm:$0xff] }
  0x3d   :  { %290 = vmatpush.msrb.mxu0 %v140_v11  ;;  %346 = vmatpush.msrb.mxu3 %v153_v21  ;;  %v72_v1 = vld [vmem:[#allocation7 + $0x58] sm:$0xff]  ;;  %v117_v2 = vld [vmem:[#allocation7 + $0x1c0] sm:$0xff]  ;;  %v114_v5 = vld [vmem:[#allocation7 + $0x1a8] sm:$0xff] }
  0x3e   :  { %310 = vmatpush.msrb.mxu1 %v188_v12  ;;  %261 = vmatmul.f32.vlgmr.msra.gmra.mxu2 %v583_v24  ;;  %v189_v3 = vld [vmem:[#allocation7 + $0x400] sm:$0xff]  ;;  %v186_v6 = vld [vmem:[#allocation7 + $0x3e8] sm:$0xff]  ;;  %v111_v8 = vld [vmem:[#allocation7 + $0x190] sm:$0xff] }
  0x3f   :  { %291 = vmatpush.msrb.mxu0 %v137_v15  ;;  %347 = vmatpush.msrb.mxu3 %v150_v25  ;;  %v69_v4 = vld [vmem:[#allocation7 + $0x40] sm:$0xff]  ;;  %v66_v7 = vld [vmem:[#allocation7 + $0x28] sm:$0xff]  ;;  %v183_v9 = vld [vmem:[#allocation7 + $0x3d0] sm:$0xff] }
  0x40   :  { %311 = vmatpush.msrb.mxu1 %v185_v16  ;;  %327 = vmatpush.msrb.mxu2 %v102_v28  ;;  %v63_v11 = vld [vmem:[#allocation7 + $0x10] sm:$0xff]  ;;  %v180_v12 = vld [vmem:[#allocation7 + $0x3b8] sm:$0xff]  ;;  %v177_v13 = vld [vmem:[#allocation7 + $0x3a0] sm:$0xff] }
  0x41   :  { %292 = vmatpush.msrb.mxu0 %v134_v18  ;;  %348 = vmatpush.msrb.mxu3 %v147_v29  ;;  %v174_v14 = vld [vmem:[#allocation7 + $0x388] sm:$0xff]  ;;  %v171_v15 = vld [vmem:[#allocation7 + $0x370] sm:$0xff]  ;;  %v168_v16 = vld [vmem:[#allocation7 + $0x358] sm:$0xff] }
  0x42   :  { %312 = vmatpush.msrb.mxu1 %v182_v19  ;;  %328 = vmatpush.msrb.mxu2 %v99_v32  ;;  %v165_v18 = vld [vmem:[#allocation7 + $0x340] sm:$0xff]  ;;  %v162_v19 = vld [vmem:[#allocation7 + $0x328] sm:$0xff]  ;;  %v159_v20 = vld [vmem:[#allocation7 + $0x310] sm:$0xff] }
  0x43   :  { %293 = vmatpush.msrb.mxu0 %v131_v22  ;;  %349 = vmatpush.msrb.mxu3 %v144_v33 }
  0x44   :  { %313 = vmatpush.msrb.mxu1 %v179_v23  ;;  %329 = vmatpush.msrb.mxu2 %v96_v36 }
  0x45   :  { %294 = vmatpush.msrb.mxu0 %v128_v26  ;;  %350 = vmatpush.msrb.mxu3 %v141_v37 }
  0x46   :  { %314 = vmatpush.msrb.mxu1 %v176_v27  ;;  %330 = vmatpush.msrb.mxu2 %v93_v40 }
  0x47   :  { %295 = vmatpush.msrb.mxu0 %v125_v30  ;;  %351 = vmatpush.msrb.mxu3 %v138_v41  ;;  %v386_v30 = vstv %s385_s1  ;;  %v401_v41 = vstv %s438_s29 }
  0x48   :  { %315 = vmatpush.msrb.mxu1 %v173_v31  ;;  %331 = vmatpush.msrb.mxu2 %v90_v44  ;;  %v393_v31 = vstv %s436_s2 }
  0x49   :  { %296 = vmatpush.msrb.mxu0 %v122_v34  ;;  %352 = vmatpush.msrb.mxu3 %v135_v45 }
  0x4a   :  { %316 = vmatpush.msrb.mxu1 %v170_v35  ;;  %332 = vmatpush.msrb.mxu2 %v87_v48 }
  0x4b   :  { %297 = vmatpush.msrb.mxu0 %v119_v38  ;;  %353 = vmatpush.msrb.mxu3 %v132_v49  ;;  %v390_v38 = vstv %s435_s27 }
  0x4c   :  { %317 = vmatpush.msrb.mxu1 %v167_v39  ;;  %333 = vmatpush.msrb.mxu2 %v84_v53  ;;  %v397_v39 = vstv %s437_s28 }
  0x4d   :  { %298 = vmatpush.msrb.mxu0 %v116_v42  ;;  %354 = vmatpush.msrb.mxu3 %v129_v54 }
  0x4e   :  { %318 = vmatpush.msrb.mxu1 %v164_v43  ;;  %334 = vmatpush.msrb.mxu2 %v81_v56 }
  0x4f   :  { %299 = vmatpush.msrb.mxu0 %v113_v46  ;;  %355 = vmatpush.msrb.mxu3 %v126_v57  ;;  %v405_v46 = vstv %s439_s30 }
  0x50   :  { %319 = vmatpush.msrb.mxu1 %v161_v47  ;;  %335 = vmatpush.msrb.mxu2 %v78_v59 }
  0x51   :  { %300 = vmatpush.msrb.mxu0 %v110_v50  ;;  %356 = vmatpush.msrb.mxu3 %v123_v60  ;;  %v409_v50 = vstv %s440_s4 }
  0x52   :  { %320 = vmatpush.msrb.mxu1 %v158_v51  ;;  %301 = vmatmul.f32.vlgmr.msrb.gmra.mxu0 %v579_v17 }
  0x53   :  { %321 = vmatmul.f32.vlgmr.msrb.gmra.mxu1 %v583_v24  ;;  %365 = vmatpush.msra.mxu0 %v204_v52 }
  0x54   :  { %336 = vmatpush.msrb.mxu2 %v75_v62  ;;  %357 = vmatpush.msrb.mxu3 %v120_v63 }
  0x55   :  { %366 = vmatpush.msra.mxu0 %v201_v55 }
  0x56   :  { %337 = vmatpush.msrb.mxu2 %v72_v1  ;;  %358 = vmatpush.msrb.mxu3 %v117_v2 }
  0x57   :  { %367 = vmatpush.msra.mxu0 %v198_v58 }
  0x58   :  { %338 = vmatpush.msrb.mxu2 %v69_v4  ;;  %359 = vmatpush.msrb.mxu3 %v114_v5 }
  0x59   :  { %368 = vmatpush.msra.mxu0 %v195_v61 }
  0x5a   :  { %339 = vmatpush.msrb.mxu2 %v66_v7  ;;  %360 = vmatpush.msrb.mxu3 %v111_v8 }
  0x5b   :  { %369 = vmatpush.msra.mxu0 %v192_v0  ;;  %361 = vmatmul.f32.vlgmr.msrb.gmra.mxu3 %v579_v17 }
  0x5c   :  { %340 = vmatpush.msrb.mxu2 %v63_v11 }
  0x5d   :  { %370 = vmatpush.msra.mxu0 %v189_v3  ;;  %341 = vmatmul.f32.vlgmr.msrb.gmra.mxu2 %v576_v10 }
  0x5f   :  { %371 = vmatpush.msra.mxu0 %v186_v6 }
  0x61   :  { %372 = vmatpush.msra.mxu0 %v183_v9 }
  0x63   :  { %373 = vmatpush.msra.mxu0 %v180_v12 }
  0x65   :  { %374 = vmatpush.msra.mxu0 %v177_v13 }
  0x67   :  { %375 = vmatpush.msra.mxu0 %v174_v14 }
  0x69   :  { %376 = vmatpush.msra.mxu0 %v171_v15 }
  0x6b   :  { %377 = vmatpush.msra.mxu0 %v168_v16 }
  0x6d   :  { %378 = vmatpush.msra.mxu0 %v165_v18 }
  0x6f   :  { %379 = vmatpush.msra.mxu0 %v162_v19 }
  0x71   :  { %380 = vmatpush.msra.mxu0 %v159_v20 }
  0x72   :  { %381 = vmatmul.f32.vlgmr.msra.gmra.mxu0 %v583_v24 }
  0xb5   :  { %v222_v21 = vpop.f32.mrf.mxu0 }
  0xb8   :  { %v242_v10 = vpop.f32.mrf.mxu1 }
  0xb9   :  { %v243_v25 = vadd.f32 %v242_v10, %v222_v21 }
  0xbd   :  { %v282_v17 = vpop.f32.mrf.mxu3 }
  0xc1   :  { %v262_v23 = vpop.f32.mrf.mxu2 }
  0xc2   :  { %v263_v28 = vadd.f32 %v262_v23, %v243_v25 }
  0xc4   :  { %v387_v24 = vadd.f32 %v386_v30, %v263_v28 }
  0xc6   :  { %v388_v36 = vmax.f32 %v387_v24, 0.0 }
  0xc8   :  { %v391_v43 = vmul.f32 %v390_v38, %v388_v36 }
  0xcf   :  { %v302_v22 = vpop.f32.mrf.mxu0 }
  0xd0   :  { %v303_v26 = vadd.f32 %v302_v22, %v282_v17  ;;  %v322_v27 = vpop.f32.mrf.mxu1 }
  0xd2   :  { %v323_v29 = vadd.f32 %v322_v27, %v303_v26 }
  0xd4   :  { %v394_v34 = vadd.f32 %v393_v31, %v323_v29 }
  0xd6   :  { %v395_v37 = vmax.f32 %v394_v34, 0.0 }
  0xd8   :  { %v398_v44 = vmul.f32 %v397_v39, %v395_v37 }
  0xda   :  { %v399_v48 = vadd.f32 %v398_v44, %v391_v43 }
  0xde   :  { %v362_v33 = vpop.f32.mrf.mxu3 }
  0xe0   :  { %v342_v32 = vpop.f32.mrf.mxu2 }
  0xe1   :  { %v363_v35 = vadd.f32 %v362_v33, %v342_v32 }
  0xef   :  { %v382_v40 = vpop.f32.mrf.mxu0 }
  0xf0   :  { %v383_v42 = vadd.f32 %v382_v40, %v363_v35 }
  0xf2   :  { %v402_v45 = vadd.f32 %v401_v41, %v383_v42 }
  0xf4   :  { %v403_v47 = vmax.f32 %v402_v45, 0.0 }
  0xf6   :  { %v406_v49 = vmul.f32 %v405_v46, %v403_v47 }
  0xf8   :  { %v407_v51 = vadd.f32 %v406_v49, %v399_v48 }
  0xfa   :  { %v410_v52 = vadd.f32 %v409_v50, %v407_v51 }
  0xfc   :  { %v411_v53 = vmul.f32 0.5, %v410_v52 }
  0xfe   :  { %447 = vtanh.f32 %v411_v53 }
 0x104   :  { %v448_v54 = vpop.eup %447 }
 0x105   :  { %v413_v55 = vadd.f32 1.0, %v448_v54 }
 0x107   :  { %v414_v56 = vmul.f32 0.5, %v413_v55 }
 0x109   :  { %415 = vst [vmem:[#allocation9] sm:$0xff] %v414_v56 }
 0x10a   :  { %426 = dma.vmem_to_hbm [thread:$0]  %s422_s6, 128, %s424_s9, [#allocation4]  }
 0x10b   :  { %539 = dma.done.wait [#allocation4], 128  }
 0x10c   :  { %540 = vsyncadd [#allocation4], 4294967168 }
 0x10d   :  { %431 = vsyncpa [#allocation3], 1 }
 0x10e   :  { %432 = vsyncpa [#allocation8], 1 }
 0x10f   :  { %433 = vsyncpa [#allocation4], 1 }
 0x110   :  { %434 = vsyncpa [#allocation5], 1 }

</bundles_post_ra>
